<compile_context>
chip_gen: v5e
topology: v5e:2x2
jax: 0.10.0
libtpu: 0.0.40
codegen_flags: <defaults>
</compile_context>

<pallas_src>
import jax
import jax.numpy as jnp
from jax.experimental import pallas as pl
from jax.experimental.pallas import tpu as pltpu


def _sprompt_concat_kernel(tid_ref, pool_ref, x_ref, out_ref):
    # tid_ref : SMEM [B]         int32 (scalar-prefetch; full array)
    # pool_ref: VMEM [T, P, D]   resident prompt table (constant block index)
    # x_ref   : VMEM [Bt, S, D]  token embeddings for this batch block
    # out_ref : VMEM [Bt, P+S, D]
    Bt, S, _ = x_ref.shape
    _, P, _ = pool_ref.shape
    base = pl.program_id(0) * Bt

    # Token embeddings: one wide, lane-dense, unmasked store.
    out_ref[:, pl.ds(P, S), :] = x_ref[...]

    # Prompt rows: gather Bt rows from the resident pool (VMEM dynamic index),
    # assemble in registers, emit a single wide store.
    rows = [pool_ref[tid_ref[base + r]] for r in range(Bt)]  # each [P, D]
    out_ref[:, pl.ds(0, P), :] = jnp.stack(rows, axis=0)


@jax.jit
def sprompt_concat(prompt_pool, x, task_ids):
    """out[b] = concat(prompt_pool[task_ids[b] mod T], x[b], axis=0).

    prompt_pool: [T, P, D] float32 (stacked s_prompt_pool[i].weight)
    x:           [B, S, D] float32
    task_ids:    scalar or [B] int (negative values wrap, Python-style)
    returns:     [B, P+S, D] float32
    """
    T, P, D = prompt_pool.shape
    B, S, D2 = x.shape
    assert D == D2

    # Guard scalar / negative ids: broadcast to [B], wrap into [0, T).
    tids = jnp.mod(jnp.broadcast_to(jnp.asarray(task_ids, jnp.int32), (B,)), T)

    # Batch block size: largest power-of-two tile (<=32) that divides B.
    Bt = 1
    for c in (32, 16, 8, 4, 2):
        if B % c == 0:
            Bt = c
            break
    # TODO(synk): for ViT-scale shapes size Bt against per-generation VMEM
    # (pltpu.get_tpu_info().vmem_capacity_bytes) and raise vmem_limit_bytes.

    bytes_accessed = int(
        (x.size + prompt_pool.size + B * (P + S) * D) * x.dtype.itemsize)

    grid_spec = pltpu.PrefetchScalarGridSpec(
        num_scalar_prefetch=1,
        grid=(B // Bt,),
        in_specs=[
            # Whole prompt pool resident in VMEM: constant block index means
            # it is fetched once and never re-DMA'd across grid steps.
            pl.BlockSpec((T, P, D), lambda g, tid: (0, 0, 0)),
            pl.BlockSpec((Bt, S, D), lambda g, tid: (g, 0, 0)),
        ],
        out_specs=pl.BlockSpec((Bt, P + S, D), lambda g, tid: (g, 0, 0)),
    )
    return pl.pallas_call(
        _sprompt_concat_kernel,
        out_shape=jax.ShapeDtypeStruct((B, P + S, D), x.dtype),
        grid_spec=grid_spec,
        compiler_params=pltpu.CompilerParams(
            dimension_semantics=("parallel",)),
        cost_estimate=pl.CostEstimate(
            flops=0, transcendentals=0, bytes_accessed=bytes_accessed),
    )(tids, prompt_pool, x)


class SPromptJax:
    """JAX/Pallas port of SPrompt (CORe50 config by default)."""

    def __init__(self, embed_dim=128, total_sessions=3, s_prompt_length=8,
                 num_classes=50, key=jax.random.PRNGKey(0)):
        k1, k2, _ = jax.random.split(key, 3)
        # s_prompt_pool[i].weight : [s_prompt_length, embed_dim]
        self.s_prompt_pool = (
            jax.random.normal(k1, (total_sessions, s_prompt_length, embed_dim),
                              jnp.float32) * 0.02)
        # classifier_pool[i]: Linear(embed_dim -> num_classes, bias=True)
        self.classifier_w = (
            jax.random.normal(k2, (total_sessions, num_classes, embed_dim),
                              jnp.float32) * 0.02)
        self.classifier_b = jnp.zeros((total_sessions, num_classes),
                                      jnp.float32)
        self.embed_dim = embed_dim
        self.s_prompt_length = s_prompt_length
        self.total_sessions = total_sessions

    def forward(self, x, task_id=-1, train=False):
        out = {}
        if train:
            tid = int(task_id) % self.total_sessions
            # The PyTorch module returns the classifier nn.Module itself;
            # here we return its (weight, bias) parameters.
            out['classifier'] = (self.classifier_w[tid], self.classifier_b[tid])
            out['x_embed_with_s'] = sprompt_concat(self.s_prompt_pool, x, tid)
        else:
            out['x_embed_with_s'] = sprompt_concat(
                self.s_prompt_pool, x, jnp.asarray(task_id, jnp.int32))
        return out


if __name__ == "__main__":
    key = jax.random.PRNGKey(0)
    k_mod, k_x, k_tid = jax.random.split(key, 3)

    B, S, D = 2, 16, 128       # batch, seq, embed_dim
    T, P = 3, 8                # total_sessions, s_prompt_length

    model = SPromptJax(embed_dim=D, total_sessions=T, s_prompt_length=P,
                       num_classes=50, key=k_mod)
    x = jax.random.normal(k_x, (B, S, D), jnp.float32)

    # --- eval mode: per-instance task ids ---
    task_ids = jax.random.randint(k_tid, (B,), 0, T, dtype=jnp.int32)
    out_eval = model.forward(x, task_id=task_ids, train=False)
    y_eval = jax.block_until_ready(out_eval['x_embed_with_s'])
    ref_eval = jnp.concatenate([model.s_prompt_pool[task_ids], x], axis=1)
    assert y_eval.shape == (B, P + S, D)
    assert jnp.allclose(y_eval, ref_eval), "eval-mode mismatch"

    # --- eval mode: scalar (default -1) id -> broadcast + wrap to last task ---
    out_neg = model.forward(x, task_id=-1, train=False)
    y_neg = jax.block_until_ready(out_neg['x_embed_with_s'])
    ref_neg = jnp.concatenate(
        [jnp.broadcast_to(model.s_prompt_pool[T - 1], (B, P, D)), x], axis=1)
    assert jnp.allclose(y_neg, ref_neg), "scalar-eval mismatch"

    # --- train mode: single task id broadcast over batch ---
    out_train = model.forward(x, task_id=1, train=True)
    y_train = jax.block_until_ready(out_train['x_embed_with_s'])
    ref_train = jnp.concatenate(
        [jnp.broadcast_to(model.s_prompt_pool[1], (B, P, D)), x], axis=1)
    assert jnp.allclose(y_train, ref_train), "train-mode mismatch"
    assert out_train['classifier'][0].shape == (50, D)

    print("KERNEL_OK")
</pallas_src>

<mosaic_0001>
module attributes {stable_mosaic.version = 11 : i64} {
  func.func @_sprompt_concat_kernel(%arg0: i32, %arg1: memref<2xi32, #tpu.memory_space<smem>>, %arg2: memref<3x8x128xf32, #tpu.memory_space<vmem>>, %arg3: memref<2x16x128xf32, #tpu.memory_space<vmem>>, %arg4: memref<2x24x128xf32, #tpu.memory_space<vmem>>) attributes {dimension_semantics = [#tpu.dimension_semantics<parallel>], iteration_bounds = array<i64: 1>, scalar_prefetch = 1 : i64, scratch_operands = 0 : i64, tpu.core_type = #tpu.core_type<tc>, window_params = [{pipeline_mode = #tpu.pipeline_mode<synchronous>, transform_indices = @transform_0, window_bounds = array<i64: 3, 8, 128>}, {transform_indices = @transform_1, window_bounds = array<i64: 2, 16, 128>}, {transform_indices = @transform_2, window_bounds = array<i64: 2, 24, 128>}]} {
    %c2_i32 = arith.constant 2 : i32
    %0 = arith.muli %arg0, %c2_i32 : i32
    %c0 = arith.constant 0 : index
    %c0_0 = arith.constant 0 : index
    %c0_1 = arith.constant 0 : index
    %1 = vector.load %arg3[%c0, %c0_0, %c0_1] : memref<2x16x128xf32, #tpu.memory_space<vmem>>, vector<2x16x128xf32>
    %c0_2 = arith.constant 0 : index
    %c8 = arith.constant 8 : index
    %c0_3 = arith.constant 0 : index
    %2 = vector.load %arg4[%c0_2, %c8, %c0_3] : memref<2x24x128xf32, #tpu.memory_space<vmem>>, vector<2x16x128xf32>
    tpu.vector_store %arg4[%c0_2, %c8, %c0_3], %1 {strides = array<i32>} : memref<2x24x128xf32, #tpu.memory_space<vmem>>, vector<2x16x128xf32>,
    %c0_i32 = arith.constant 0 : i32
    %3 = arith.addi %0, %c0_i32 : i32
    %4 = arith.index_cast %3 : i32 to index
    %5 = memref.load %arg1[%4] : memref<2xi32, #tpu.memory_space<smem>>
    %6 = arith.index_cast %5 : i32 to index
    %c0_4 = arith.constant 0 : index
    %c0_5 = arith.constant 0 : index
    %7 = vector.load %arg2[%6, %c0_4, %c0_5] : memref<3x8x128xf32, #tpu.memory_space<vmem>>, vector<1x8x128xf32>
    %8 = vector.shape_cast %7 : vector<1x8x128xf32> to vector<8x128xf32>
    %c1_i32 = arith.constant 1 : i32
    %9 = arith.addi %0, %c1_i32 : i32
    %10 = arith.index_cast %9 : i32 to index
    %11 = memref.load %arg1[%10] : memref<2xi32, #tpu.memory_space<smem>>
    %12 = arith.index_cast %11 : i32 to index
    %c0_6 = arith.constant 0 : index
    %c0_7 = arith.constant 0 : index
    %13 = vector.load %arg2[%12, %c0_6, %c0_7] : memref<3x8x128xf32, #tpu.memory_space<vmem>>, vector<1x8x128xf32>
    %14 = vector.shape_cast %13 : vector<1x8x128xf32> to vector<8x128xf32>
    %15 = vector.shape_cast %8 : vector<8x128xf32> to vector<1x8x128xf32>
    %16 = vector.shape_cast %14 : vector<8x128xf32> to vector<1x8x128xf32>
    %17 = tpu.concatenate %15, %16 in 0 : vector<1x8x128xf32>, vector<1x8x128xf32> -> vector<2x8x128xf32>
    %c0_8 = arith.constant 0 : index
    %c0_9 = arith.constant 0 : index
    %c0_10 = arith.constant 0 : index
    %18 = vector.load %arg4[%c0_8, %c0_9, %c0_10] : memref<2x24x128xf32, #tpu.memory_space<vmem>>, vector<2x8x128xf32>
    tpu.vector_store %arg4[%c0_8, %c0_9, %c0_10], %17 {strides = array<i32>} : memref<2x24x128xf32, #tpu.memory_space<vmem>>, vector<2x8x128xf32>,
    return
  }
  func.func @transform_0(%arg0: i32, %arg1: memref<2xi32, #tpu.memory_space<smem>>) -> (i32, i32, i32) {
    %c0_i32 = arith.constant 0 : i32
    %c0_i32_0 = arith.constant 0 : i32
    %c0_i32_1 = arith.constant 0 : i32
    %c0_i32_2 = arith.constant 0 : i32
    return %c0_i32, %c0_i32_0, %c0_i32_1 : i32, i32, i32
  }
  func.func @transform_1(%arg0: i32, %arg1: memref<2xi32, #tpu.memory_space<smem>>) -> (i32, i32, i32) {
    %c0_i32 = arith.constant 0 : i32
    %c0_i32_0 = arith.constant 0 : i32
    %c0_i32_1 = arith.constant 0 : i32
    return %arg0, %c0_i32, %c0_i32_0 : i32, i32, i32
  }
  func.func @transform_2(%arg0: i32, %arg1: memref<2xi32, #tpu.memory_space<smem>>) -> (i32, i32, i32) {
    %c0_i32 = arith.constant 0 : i32
    %c0_i32_0 = arith.constant 0 : i32
    %c0_i32_1 = arith.constant 0 : i32
    return %arg0, %c0_i32, %c0_i32_0 : i32, i32, i32
  }
}

</mosaic_0001>

<bundles_post_ra>
// kernel: sprompt_concat.1
= control target key start
LH: loop header
LB: loop body
LE: loop exit
PB: predicated region body
PF: predicated region fallthrough
CT: control target
= control target key end

     0   :  { %s198_s15 = smov [#allocation3]   ;;  %s245_s0 = inlined_call_operand.vmem [shape: s32[2], index: 0, kind: input, shape index: {}]   ;;  %s246_s1 = inlined_call_operand.hbm [shape: f32[3,8,128], index: 1, kind: input, shape index: {}]   ;;  %s247_s2 = inlined_call_operand.hbm [shape: f32[2,16,128], index: 2, kind: input, shape index: {}]   ;;  %s248_s3 = inlined_call_operand.hbm [shape: f32[2,24,128], index: 3, kind: output, shape index: {}]  }
   0x1   :  { %s9_s14 = sshll.u32 %s245_s0, 4  ;;  %s10_s14 = int_to_ptr.vmem [resolvable:$true] %s9_s14 }
   0x2   :  { %12 = dma.vmem_to_smem %s10_s14, 16, %s198_s15, [#allocation2] }
   0x3   :  { %190 = dma.done.wait [#allocation2], 16 }
   0x4   :  { %191 = vsyncadd [#allocation2], 4294967280 }
   0x5   :  { %15 = sfence }
   0x6   :  { %16 = vsyncpa [#allocation5], 0 }
   0x7   :  { %17 = vsyncpa [#allocation8], 0 }
   0x8   :  { %18 = vsyncpa [#allocation6], 0  ;;  %s23_s18 = sshll.u32 %s246_s1, 4  ;;  %s199_s19 = smov [#allocation4]   ;;  %s24_s18 = int_to_ptr.hbm [resolvable:$true] %s23_s18 }
   0x9   :  { %s25_s20 = sshll.u32 %s199_s19, 4  ;;  %s36_s0 = sshll.u32 %s247_s2, 4  ;;  %s26_s20 = int_to_ptr.vmem [resolvable:$true] %s25_s20  ;;  %s37_s0 = int_to_ptr.hbm [resolvable:$true] %s36_s0 }
   0xa   :  { %s200_s23 = smov 128   ;;  %s201_s24 = smov 8  }
   0xb   :  { %31 = dma.hbm_to_vmem [thread:$0]  %s24_s18, 384, %s26_s20, [#allocation5], %s200_s23, %s200_s23, %s201_s24  }
   0xc   :  { %s202_s25 = smov [#allocation7]  }
   0xd   :  { %s38_s26 = sshll.u32 %s202_s25, 4  ;;  %s39_s26 = int_to_ptr.vmem [resolvable:$true] %s38_s26 }
   0xe   :  { %44 = dma.hbm_to_vmem [thread:$0]  %s37_s0, 512, %s39_s26, [#allocation8], %s200_s23, %s200_s23, %s201_s24  }
   0xf   :  { %192 = dma.done.wait [#allocation5], 384  }
  0x10   :  { %193 = vsyncadd [#allocation5], 4294966912 }
  0x11   :  { %194 = dma.done.wait [#allocation8], 512  }
  0x12   :  { %195 = vsyncadd [#allocation8], 4294966784  ;;  %s62_s1 = sld [smem:[#allocation3]]  ;;  %s79_s29 = sshll.u32 %s248_s3, 4  ;;  %v54_v0 = vld [vmem:[#allocation7] sm:$0xff]  ;;  %v55_v1 = vld [vmem:[#allocation7 + $0x8] sm:$0xff]  ;;  %s80_s29 = int_to_ptr.hbm [resolvable:$true] %s79_s29 }
  0x13   :  { %s98_s2 = sld [smem:[#allocation3 + $0x1]]  ;;  %v56_v2 = vld [vmem:[#allocation7 + $0x10] sm:$0xff]  ;;  %s203_s4 = smov [#allocation9]   ;;  %58 = vst [vmem:[#allocation9 + $0x8] sm:$0xff] %v54_v0  ;;  %v57_v3 = vld [vmem:[#allocation7 + $0x18] sm:$0xff] }
  0x14   :  { %s77_s5 = sshll.u32 %s203_s4, 4  ;;  %59 = vst [vmem:[#allocation9 + $0x10] sm:$0xff] %v55_v1  ;;  %s78_s5 = int_to_ptr.vmem [resolvable:$true] %s77_s5 }
  0x15   :  { %60 = vst [vmem:[#allocation9 + $0x20] sm:$0xff] %v56_v2 }
  0x16   :  { %61 = vst [vmem:[#allocation9 + $0x28] sm:$0xff] %v57_v3 }
  0x18   :  { %s97_s30 = sshll.u32 %s62_s1, 3 }
  0x19   :  { %s99_s6 = sshll.u32 %s98_s2, 3  ;;  %s64_s7 = scalar_lea.vmem [#allocation4], %s97_s30 }
  0x1a   :  { %v65_v4 = vld [vmem:[%s64_s7] sm:$0xff]  ;;  %s69_s8 = scalar_lea.vmem [#allocation4], %s99_s6 }
  0x1b   :  { %v70_v5 = vld [vmem:[%s69_s8] sm:$0xff]  ;;  %71 = vst [vmem:[#allocation9] sm:$0xff] %v65_v4 }
  0x1c   :  { %72 = vst [vmem:[#allocation9 + $0x18] sm:$0xff] %v70_v5 }
  0x1d   :  { %85 = dma.vmem_to_hbm [thread:$0]  %s78_s5, 768, %s80_s29, [#allocation6], %s200_s23, %s200_s23, %s201_s24  }
  0x1e   :  { %196 = dma.done.wait [#allocation6], 768  }
  0x1f   :  { %197 = vsyncadd [#allocation6], 4294966528 }
  0x20   :  { %90 = vsyncpa [#allocation5], 1 }
  0x21   :  { %91 = vsyncpa [#allocation8], 1 }
  0x22   :  { %92 = vsyncpa [#allocation6], 1 }

</bundles_post_ra>
